<compile_context>
chip_gen: v5e
topology: v5e:2x2
jax: 0.10.0
libtpu: 0.0.40
codegen_flags: <defaults>
</compile_context>

<pallas_src>
import jax
import jax.numpy as jnp
from jax import lax
from jax.experimental import pallas as pl
from jax.experimental.pallas import tpu as pltpu


# -----------------------------------------------------------------------------
# Fused Pallas kernel: all three Blocks of the Layer for one image.
# -----------------------------------------------------------------------------
def _layer_kernel(xp_ref, w_ref, b_ref, o_ref):
    # xp_ref : (1, H+2, (W+2)*Cin_tot) padded NHWC rows of one image; lane axis
    #                                  is (W, channel) flattened.
    # w_ref  : (3, (W+2)*Cin_tot, W*Ctot) banded conv weights (connection
    #                                  scalars folded in), one slab per dy.
    # b_ref  : (1, W*Ctot)             bias tiled over W.
    # o_ref  : (H, W*Ctot)             lane-dense output rows (Ctot = 3*Cout).
    H = o_ref.shape[0]
    acc = jnp.zeros(o_ref.shape, jnp.float32)
    # 3x3 conv == 3 vertical-tap matmuls; the dx taps are baked into the
    # banded weight, so there is no im2col / relayout inside the kernel.
    # For v6e/v7x MXU peak, cast both dot operands to bfloat16 here (kept f32
    # so the verification against the f32 reference stays tight).
    for dy in range(3):
        x_dy = xp_ref[0, dy:dy + H, :]                 # cheap sublane-offset slice
        acc = acc + jnp.dot(x_dy, w_ref[dy], preferred_element_type=jnp.float32)
    acc = acc + b_ref[...]
    o_ref[...] = jnp.maximum(acc, 0.0).astype(o_ref.dtype)


def _layer_pallas(xpad_flat, w_banded, bias_row, *, B, H, W, Ctot):
    Hp, WpC = xpad_flat.shape[1], xpad_flat.shape[2]
    return pl.pallas_call(
        _layer_kernel,
        out_shape=jax.ShapeDtypeStruct((B * H, W * Ctot), jnp.float32),
        grid_spec=pltpu.PrefetchScalarGridSpec(
            num_scalar_prefetch=0,
            grid=(B,),
            in_specs=[
                pl.BlockSpec((1, Hp, WpC), lambda b: (b, 0, 0)),      # per-image rows
                pl.BlockSpec(w_banded.shape, lambda b: (0, 0, 0)),    # weights (resident)
                pl.BlockSpec(bias_row.shape, lambda b: (0, 0)),       # bias (resident)
            ],
            out_specs=pl.BlockSpec((H, W * Ctot), lambda b: (b, 0)),
        ),
        compiler_params=pltpu.CompilerParams(
            dimension_semantics=("parallel",),        # megacore splits the batch axis
            vmem_limit_bytes=32 * 1024 * 1024,        # fits v7x's smaller VMEM
        ),
    )(xpad_flat, w_banded, bias_row)


# -----------------------------------------------------------------------------
# One-time parameter preprocessing: fold scalars into the weights and build the
# banded (dx-absorbed) weight slab + W-tiled bias used by the fused kernel.
# -----------------------------------------------------------------------------
def prepare_layer(params, connections, num_upstream, Cin, Cout, W):
    Cin_tot = num_upstream * Cin
    Ctot = 3 * Cout
    Wp = W + 2

    # wc[dy, dx, i*Cin + c, b*Cout + o] = scalar_{b,i} * W_b[o, c, dy, dx]
    wc = jnp.zeros((3, 3, Cin_tot, Ctot), jnp.float32)
    for b_idx, blk in enumerate(("1", "2", "3")):
        w_oihw = params["blocks"][blk]["w"]                    # (Cout, Cin, 3, 3)
        w_hwio = jnp.transpose(w_oihw, (2, 3, 1, 0))           # (3, 3, Cin, Cout)
        for i in connections[blk]:
            s = jnp.float32(params["scalars"][blk + str(i)])
            wc = wc.at[:, :, i * Cin:(i + 1) * Cin,
                       b_idx * Cout:(b_idx + 1) * Cout].set(s * w_hwio)

    # Banded weight: absorb the horizontal tap dx and the output position w.
    #   w_banded[dy, wp*Cin_tot + ci, w*Ctot + o] = wc[dy, wp - w, ci, o]  (0<=wp-w<=2)
    w_banded = jnp.zeros((3, Wp * Cin_tot, W * Ctot), jnp.float32)
    for wcol in range(W):
        for dx in range(3):
            wp = wcol + dx
            w_banded = w_banded.at[:, wp * Cin_tot:(wp + 1) * Cin_tot,
                                   wcol * Ctot:(wcol + 1) * Ctot].set(wc[:, dx])

    bcat = jnp.concatenate([params["blocks"][blk]["b"].reshape(Cout)
                            for blk in ("1", "2", "3")])
    bias_row = jnp.tile(bcat, W).reshape(1, W * Ctot)
    return w_banded, bias_row


# -----------------------------------------------------------------------------
# Fused forward of the whole Layer: returns [block1, block2, block3] in NCHW.
# -----------------------------------------------------------------------------
@jax.jit
def layer_forward(t_list, w_banded, bias_row):
    B, _, H, W = t_list[0].shape
    # Shared input prep: NCHW -> NHWC once per upstream tensor, concat on the
    # channel axis, zero-pad spatially, flatten (W, C) onto the lane axis.
    # TODO(synk): in a full network keep activations channels-last end-to-end
    # so these transposes disappear.
    xcat = jnp.concatenate([jnp.transpose(t, (0, 2, 3, 1)) for t in t_list], axis=-1)
    Cin_tot = xcat.shape[-1]
    xpad = jnp.pad(xcat, ((0, 0), (1, 1), (1, 1), (0, 0)))
    xpad_flat = xpad.reshape(B, H + 2, (W + 2) * Cin_tot)

    Ctot = bias_row.shape[1] // W
    Cout = Ctot // 3
    out = _layer_pallas(xpad_flat, w_banded, bias_row, B=B, H=H, W=W, Ctot=Ctot)
    out = out.reshape(B, H, W, Ctot)
    return [jnp.transpose(out[..., k * Cout:(k + 1) * Cout], (0, 3, 1, 2))
            for k in range(3)]


# -----------------------------------------------------------------------------
# Pure-JAX reference (verification only).
# -----------------------------------------------------------------------------
def block_reference(xs_nchw, scal, w_oihw, bias):
    Cout = w_oihw.shape[0]
    xsum = sum(s * x for s, x in zip(scal, xs_nchw))           # NCHW
    x_nhwc = jnp.transpose(xsum, (0, 2, 3, 1))
    w_hwio = jnp.transpose(w_oihw, (2, 3, 1, 0))
    y = lax.conv_general_dilated(
        x_nhwc, w_hwio, window_strides=(1, 1), padding="SAME",
        dimension_numbers=("NHWC", "HWIO", "NHWC"),
        precision=lax.Precision.HIGHEST)
    y = jnp.maximum(y + bias.reshape(1, 1, 1, Cout), 0.0)
    return jnp.transpose(y, (0, 3, 1, 2))


# -----------------------------------------------------------------------------
# Main
# -----------------------------------------------------------------------------
if __name__ == "__main__":
    key = jax.random.PRNGKey(0)
    B, Cin, Cout, H, W = 2, 4, 8, 16, 16
    num_upstream = 2

    # Deterministic wiring (what baselineWire/wire would have produced).
    connections = {"1": [0], "2": [0, 1], "3": [1]}

    k_t0, k_t1, kw1, kw2, kw3, kb1, kb2, kb3 = jax.random.split(key, 8)

    # Upstream tensors t (NCHW, as in PyTorch).
    t_list = [
        jax.random.normal(k_t0, (B, Cin, H, W), jnp.float32),
        jax.random.normal(k_t1, (B, Cin, H, W), jnp.float32),
    ]

    def make_block(kw, kb):
        # PyTorch Conv2d layouts: weight (Cout, Cin, 3, 3), bias (Cout,).
        return {"w": jax.random.normal(kw, (Cout, Cin, 3, 3), jnp.float32) * 0.1,
                "b": jax.random.normal(kb, (Cout,), jnp.float32) * 0.1}

    params = {
        "blocks": {
            "1": make_block(kw1, kb1),
            "2": make_block(kw2, kb2),
            "3": make_block(kw3, kb3),
        },
        "scalars": {"10": 0.7, "20": 0.3, "21": 0.5, "31": 0.9},
    }

    # One-time preprocessing: scalar folding + banded-weight construction.
    w_banded, bias_row = prepare_layer(params, connections, num_upstream,
                                       Cin, Cout, W)

    outs = layer_forward(t_list, w_banded, bias_row)
    outs = [jax.block_until_ready(o) for o in outs]

    # Verify against the plain-JAX reference of the original per-block math.
    for k, blk in enumerate(("1", "2", "3")):
        conn = connections[blk]
        xs = [t_list[i] for i in conn]
        scal = [params["scalars"][blk + str(i)] for i in conn]
        ref = block_reference(xs, scal, params["blocks"][blk]["w"],
                              params["blocks"][blk]["b"])
        assert outs[k].shape == (B, Cout, H, W)
        assert jnp.allclose(outs[k], ref, atol=2e-4, rtol=2e-4), f"block {blk} mismatch"

    print("KERNEL_OK")
</pallas_src>

<mosaic_0001>
module attributes {stable_mosaic.version = 11 : i64} {
  func.func @_layer_kernel(%arg0: i32, %arg1: memref<1x18x144xf32, #tpu.memory_space<vmem>>, %arg2: memref<3x144x384xf32, #tpu.memory_space<vmem>>, %arg3: memref<1x384xf32, #tpu.memory_space<vmem>>, %arg4: memref<16x384xf32, #tpu.memory_space<vmem>>) attributes {dimension_semantics = [#tpu.dimension_semantics<parallel>], iteration_bounds = array<i64: 2>, scalar_prefetch = 0 : i64, scratch_operands = 0 : i64, tpu.core_type = #tpu.core_type<tc>, window_params = [{transform_indices = @transform_0, window_bounds = array<i64: 1, 18, 144>}, {pipeline_mode = #tpu.pipeline_mode<synchronous>, transform_indices = @transform_1, window_bounds = array<i64: 3, 144, 384>}, {pipeline_mode = #tpu.pipeline_mode<synchronous>, transform_indices = @transform_2, window_bounds = array<i64: 1, 384>}, {transform_indices = @transform_3, window_bounds = array<i64: 16, 384>}]} {
    %cst = arith.constant 0.000000e+00 : f32
    %0 = vector.broadcast %cst : f32 to vector<16x384xf32>
    %c0 = arith.constant 0 : index
    %c0_0 = arith.constant 0 : index
    %c0_1 = arith.constant 0 : index
    %1 = vector.load %arg1[%c0, %c0_0, %c0_1] : memref<1x18x144xf32, #tpu.memory_space<vmem>>, vector<1x16x144xf32>
    %2 = vector.shape_cast %1 : vector<1x16x144xf32> to vector<16x144xf32>
    %c0_2 = arith.constant 0 : index
    %c0_3 = arith.constant 0 : index
    %c0_4 = arith.constant 0 : index
    %3 = vector.load %arg2[%c0_2, %c0_3, %c0_4] : memref<3x144x384xf32, #tpu.memory_space<vmem>>, vector<1x144x384xf32>
    %4 = vector.shape_cast %3 : vector<1x144x384xf32> to vector<144x384xf32>
    %cst_5 = arith.constant dense<0.000000e+00> : vector<16x384xf32>
    %5 = tpu.matmul %2, %4, %cst_5 {dimension_numbers = #tpu.dot_dimension_numbers<[1], [0], [0], [1], [0, 0, 1, 1], [], []>} : vector<16x144xf32>, vector<144x384xf32>, vector<16x384xf32> -> vector<16x384xf32>
    %6 = arith.addf %0, %5 : vector<16x384xf32>
    %c0_6 = arith.constant 0 : index
    %c1 = arith.constant 1 : index
    %c0_7 = arith.constant 0 : index
    %7 = vector.load %arg1[%c0_6, %c1, %c0_7] : memref<1x18x144xf32, #tpu.memory_space<vmem>>, vector<1x16x144xf32>
    %8 = vector.shape_cast %7 : vector<1x16x144xf32> to vector<16x144xf32>
    %c1_8 = arith.constant 1 : index
    %c0_9 = arith.constant 0 : index
    %c0_10 = arith.constant 0 : index
    %9 = vector.load %arg2[%c1_8, %c0_9, %c0_10] : memref<3x144x384xf32, #tpu.memory_space<vmem>>, vector<1x144x384xf32>
    %10 = vector.shape_cast %9 : vector<1x144x384xf32> to vector<144x384xf32>
    %cst_11 = arith.constant dense<0.000000e+00> : vector<16x384xf32>
    %11 = tpu.matmul %8, %10, %cst_11 {dimension_numbers = #tpu.dot_dimension_numbers<[1], [0], [0], [1], [0, 0, 1, 1], [], []>} : vector<16x144xf32>, vector<144x384xf32>, vector<16x384xf32> -> vector<16x384xf32>
    %12 = arith.addf %6, %11 : vector<16x384xf32>
    %c0_12 = arith.constant 0 : index
    %c2 = arith.constant 2 : index
    %c0_13 = arith.constant 0 : index
    %13 = vector.load %arg1[%c0_12, %c2, %c0_13] : memref<1x18x144xf32, #tpu.memory_space<vmem>>, vector<1x16x144xf32>
    %14 = vector.shape_cast %13 : vector<1x16x144xf32> to vector<16x144xf32>
    %c2_14 = arith.constant 2 : index
    %c0_15 = arith.constant 0 : index
    %c0_16 = arith.constant 0 : index
    %15 = vector.load %arg2[%c2_14, %c0_15, %c0_16] : memref<3x144x384xf32, #tpu.memory_space<vmem>>, vector<1x144x384xf32>
    %16 = vector.shape_cast %15 : vector<1x144x384xf32> to vector<144x384xf32>
    %cst_17 = arith.constant dense<0.000000e+00> : vector<16x384xf32>
    %17 = tpu.matmul %14, %16, %cst_17 {dimension_numbers = #tpu.dot_dimension_numbers<[1], [0], [0], [1], [0, 0, 1, 1], [], []>} : vector<16x144xf32>, vector<144x384xf32>, vector<16x384xf32> -> vector<16x384xf32>
    %18 = arith.addf %12, %17 : vector<16x384xf32>
    %c0_18 = arith.constant 0 : index
    %c0_19 = arith.constant 0 : index
    %19 = vector.load %arg3[%c0_18, %c0_19] : memref<1x384xf32, #tpu.memory_space<vmem>>, vector<1x384xf32>
    %20 = vector.broadcast %19 : vector<1x384xf32> to vector<16x384xf32>
    %21 = arith.addf %18, %20 : vector<16x384xf32>
    %cst_20 = arith.constant 0.000000e+00 : f32
    %22 = vector.broadcast %cst_20 : f32 to vector<16x384xf32>
    %23 = arith.maximumf %21, %22 : vector<16x384xf32>
    %c0_21 = arith.constant 0 : index
    %c0_22 = arith.constant 0 : index
    %24 = vector.load %arg4[%c0_21, %c0_22] : memref<16x384xf32, #tpu.memory_space<vmem>>, vector<16x384xf32>
    tpu.vector_store %arg4[%c0_21, %c0_22], %23 {strides = array<i32>} : memref<16x384xf32, #tpu.memory_space<vmem>>, vector<16x384xf32>,
    return
  }
  func.func @transform_0(%arg0: i32) -> (i32, i32, i32) {
    %c0_i32 = arith.constant 0 : i32
    %c0_i32_0 = arith.constant 0 : i32
    %c0_i32_1 = arith.constant 0 : i32
    return %arg0, %c0_i32, %c0_i32_0 : i32, i32, i32
  }
  func.func @transform_1(%arg0: i32) -> (i32, i32, i32) {
    %c0_i32 = arith.constant 0 : i32
    %c0_i32_0 = arith.constant 0 : i32
    %c0_i32_1 = arith.constant 0 : i32
    %c0_i32_2 = arith.constant 0 : i32
    return %c0_i32, %c0_i32_0, %c0_i32_1 : i32, i32, i32
  }
  func.func @transform_2(%arg0: i32) -> (i32, i32) {
    %c0_i32 = arith.constant 0 : i32
    %c0_i32_0 = arith.constant 0 : i32
    %c0_i32_1 = arith.constant 0 : i32
    return %c0_i32, %c0_i32_0 : i32, i32
  }
  func.func @transform_3(%arg0: i32) -> (i32, i32) {
    %c0_i32 = arith.constant 0 : i32
    %c0_i32_0 = arith.constant 0 : i32
    return %arg0, %c0_i32 : i32, i32
  }
}

</mosaic_0001>

<bundles_post_ra>
// kernel: layer_forward.1
= control target key start
LH: loop header
LB: loop body
LE: loop exit
PB: predicated region body
PF: predicated region fallthrough
CT: control target
= control target key end

     0   :  { %s1078_s12 = smov 0   ;;  %s1683_s0 = inlined_call_operand.vmem [shape: f32[2,18,144], index: 0, kind: input, shape index: {}]   ;;  %s1684_s1 = inlined_call_operand.vmem [shape: f32[3,144,384], index: 1, kind: input, shape index: {}]   ;;  %s1685_s2 = inlined_call_operand.vmem [shape: f32[1,384], index: 2, kind: input, shape index: {}]   ;;  %s1686_s3 = inlined_call_operand.vmem [shape: f32[32,384], index: 3, kind: output, shape index: {}]  }
   0x1 LB: > { %s1084_s13 = sadd.s32 4294967295, %s1056_s12   ;;  %p908_p0 = scmp.ge.s32.totalorder %s1056_s12, 1  ;;  %s1056_s12 = sphi %s1078_s12, %s13_s12  }
   0x2   : > { %p137_p1 = scmp.lt.s32.totalorder %s1056_s12, 3 }
   0x4   : > { %p138_p2 = pnand %p908_p0, %p137_p1 }
   0x5   : > { %p162_p3 = scmp.lt.s32.totalorder (!%p138_p2), %s1084_s13, 1  ;;  %s910_s28 = sshll.u32 (!%p138_p2), %s1084_s13, 1 }
   0x6   : > { %141 = sbr.rel (%p138_p2) target bundleno = 266 (0x10a), region = 32  ;;  %p168_p4 = scmp.lt.s32.totalorder (!%p138_p2), %s910_s28, 3 }
   0xb   : > { %v957_v0 = vld [vmem:[%s1684_s1 + $0x318] sm:$0xff]  ;;  %v963_v1 = vld [vmem:[%s1684_s1 + $0x348] sm:$0xff]  ;;  %v958_v2 = vld [vmem:[%s1684_s1 + $0x320] sm:$0xff]  ;;  %s163_s30 = scalar_select %p162_p3, %s1084_s13, 1  ;;  %vm297_vm0 = vcmask 1046528   ;;  %vm310_vm1 = vcmask 130048  }
   0xc   : > { %315 = vmatpush.msra.mxu0 %v957_v0  ;;  %352 = vmatpush.msra.mxu1 %v963_v1  ;;  %v954_v3 = vld [vmem:[%s1684_s1 + $0x300] sm:$0xff]  ;;  %v960_v4 = vld [vmem:[%s1684_s1 + $0x330] sm:$0xff]  ;;  %v955_v5 = vld [vmem:[%s1684_s1 + $0x308] sm:$0xff]  ;;  %vm659_vm2 = vcmask 1045504   ;;  %s1688_s28 = smov (!%p168_p4, %s910_s28), 3 }
   0xd   : > { %361 = vmatpush.msra.mxu2 %v958_v2  ;;  %v959_v6 = vld [vmem:[%s1684_s1 + $0x328] sm:$0xff]  ;;  %v952_v8 = vld [vmem:[%s1684_s1 + $0x2f0] sm:$0xff]  ;;  %v961_v12 = vld [vmem:[%s1684_s1 + $0x338] sm:$0xff]  ;;  %s1040_s16 = smul.u32 48, %s163_s30 }
   0xe   : > { %v951_v7 = vld [vmem:[%s1684_s1 + $0x2e8] sm:$0xff]  ;;  %316 = vmatpush.msra.mxu0 %v954_v3  ;;  %353 = vmatpush.msra.mxu1 %v960_v4  ;;  %v964_v9 = vld [vmem:[%s1684_s1 + $0x350] sm:$0xff]  ;;  %v949_v13 = vld [vmem:[%s1684_s1 + $0x2d8] sm:$0xff]  ;;  %s1041_s13 = smul.u32 24, %s1688_s28 }
   0xf   : > { %v956_v10 = vld [vmem:[%s1684_s1 + $0x310] sm:$0xff]  ;;  %362 = vmatpush.msra.mxu2 %v955_v5  ;;  %398 = vmatpush.msra.mxu3 %v964_v9  ;;  %v953_v14 = vld [vmem:[%s1684_s1 + $0x2f8] sm:$0xff]  ;;  %v946_v16 = vld [vmem:[%s1684_s1 + $0x2c0] sm:$0xff]  ;;  %s1147_s29 = scalar_lea.vmem %s1683_s0, %s1040_s16 }
  0x10   : > { %407 = vmatpush.msrb.mxu1 %v959_v6  ;;  %v948_v11 = vld [vmem:[%s1684_s1 + $0x2d0] sm:$0xff]  ;;  %317 = vmatpush.msra.mxu0 %v951_v7  ;;  %v945_v15 = vld [vmem:[%s1684_s1 + $0x2b8] sm:$0xff]  ;;  %v950_v18 = vld [vmem:[%s1684_s1 + $0x2e0] sm:$0xff]  ;;  %s1668_s7 = scalar_lea.vmem %s1686_s3, %s1041_s13 }
  0x11   : > { %363 = vmatpush.msra.mxu2 %v952_v8  ;;  %v965_v17 = vld [vmem:[%s1684_s1 + $0x358] sm:$0xff]  ;;  %399 = vmatpush.msra.mxu3 %v961_v12  ;;  %v233_v20 = vld [vmem:[%s1147_s29 + $0x8] sm:$0xfe]  ;;  %v942_v21 = vld [vmem:[%s1684_s1 + $0x2a0] sm:$0xff] }
  0x12   : > { %408 = vmatpush.msrb.mxu1 %v956_v10  ;;  %318 = vmatpush.msra.mxu0 %v948_v11  ;;  %v1153_v19 = vld [vmem:[%s1147_s29 + $0x18] sm:$0xff]  ;;  %v301_v22 = vrot.slane %v233_v20, 1  ;;  %v943_v24 = vld [vmem:[%s1684_s1 + $0x2a8] sm:$0xff]  ;;  %v962_v25 = vld [vmem:[%s1684_s1 + $0x340] sm:$0xff] }
  0x13   : > { %364 = vmatpush.msra.mxu2 %v949_v13  ;;  %v302_v23 = vrot.slane %v1153_v19, 1  ;;  %444 = vmatpush.msrb.mxu3 %v965_v17  ;;  %v947_v27 = vld [vmem:[%s1684_s1 + $0x2c8] sm:$0xff]  ;;  %v940_v30 = vld [vmem:[%s1684_s1 + $0x290] sm:$0xff]  ;;  %v937_v34 = vld [vmem:[%s1684_s1 + $0x278] sm:$0xff] }
  0x14   : > { %409 = vmatpush.msrb.mxu1 %v953_v14  ;;  %319 = vmatpush.msra.mxu0 %v945_v15  ;;  %v223_v28 = vld [vmem:[%s1684_s1 + $0x168] sm:$0xff]  ;;  %v944_v31 = vld [vmem:[%s1684_s1 + $0x2b0] sm:$0xff]  ;;  %v941_v36 = vld [vmem:[%s1684_s1 + $0x298] sm:$0xff] }
  0x15   : > { %365 = vmatpush.msra.mxu2 %v946_v16  ;;  %v1167_v26 = vsel %vm297_vm0, %v301_v22, %v302_v23  ;;  %v939_v29 = vld [vmem:[%s1684_s1 + $0x288] sm:$0xff]  ;;  %445 = vmatpush.msrb.mxu3 %v962_v25  ;;  %v220_v32 = vld [vmem:[%s1684_s1 + $0x150] sm:$0xff]  ;;  %v217_v37 = vld [vmem:[%s1684_s1 + $0x138] sm:$0xff] }
  0x16   : > { %410 = vmatpush.msrb.mxu1 %v950_v18  ;;  %320 = vmatpush.msra.mxu0 %v942_v21  ;;  %v936_v33 = vld [vmem:[%s1684_s1 + $0x270] sm:$0xff]  ;;  %v235_v35 = vld [vmem:[%s1147_s29 + $0x28] sm:$0x1]  ;;  %v933_v39 = vld [vmem:[%s1684_s1 + $0x258] sm:$0xff] }
  0x17   : > { %968 = vmatmul.msk.f32.vlgmr.msra.gmra.mxu3 %vm310_vm1, %v1167_v26  ;;  %366 = vmatpush.msra.mxu2 %v943_v24  ;;  %v306_v38 = vrot.slane %v235_v35, 1  ;;  %v934_v40 = vld [vmem:[%s1684_s1 + $0x260] sm:$0xff]  ;;  %v931_v44 = vld [vmem:[%s1684_s1 + $0x248] sm:$0xff]  ;;  %v928_v49 = vld [vmem:[%s1684_s1 + $0x230] sm:$0xff] }
  0x18   : > { %411 = vmatpush.msrb.mxu1 %v947_v27  ;;  %458 = vmatpush.msra.mxu3 %v223_v28  ;;  %v938_v41 = vld [vmem:[%s1684_s1 + $0x280] sm:$0xff]  ;;  %v935_v46 = vld [vmem:[%s1684_s1 + $0x268] sm:$0xff]  ;;  %v932_v50 = vld [vmem:[%s1684_s1 + $0x250] sm:$0xff] }
  0x19   : > { %321 = vmatpush.msra.mxu0 %v939_v29  ;;  %367 = vmatpush.msra.mxu2 %v940_v30  ;;  %v214_v42 = vld [vmem:[%s1684_s1 + $0x120] sm:$0xff]  ;;  %v1221_v45 = vsel %vm297_vm0, %v302_v23, %v306_v38  ;;  %v211_v47 = vld [vmem:[%s1684_s1 + $0x108] sm:$0xff]  ;;  %v208_v51 = vld [vmem:[%s1684_s1 + $0xf0] sm:$0xff] }
  0x1a   : > { %412 = vmatpush.msrb.mxu1 %v944_v31  ;;  %459 = vmatpush.msra.mxu3 %v220_v32  ;;  %v930_v43 = vld [vmem:[%s1684_s1 + $0x240] sm:$0xff]  ;;  %v927_v48 = vld [vmem:[%s1684_s1 + $0x228] sm:$0xff]  ;;  %v924_v52 = vld [vmem:[%s1684_s1 + $0x210] sm:$0xff] }
  0x1b   : > { %322 = vmatpush.msra.mxu0 %v936_v33  ;;  %368 = vmatpush.msra.mxu2 %v937_v34  ;;  %v925_v53 = vld [vmem:[%s1684_s1 + $0x218] sm:$0xff]  ;;  %v922_v57 = vld [vmem:[%s1684_s1 + $0x200] sm:$0xff]  ;;  %v1270_v60 = vld [vmem:[%s1147_s29 + $0x10] sm:$0xff] }
  0x1c   : > { %413 = vmatpush.msrb.mxu1 %v941_v36  ;;  %460 = vmatpush.msra.mxu3 %v217_v37  ;;  %v929_v54 = vld [vmem:[%s1684_s1 + $0x238] sm:$0xff]  ;;  %v926_v58 = vld [vmem:[%s1684_s1 + $0x220] sm:$0xff]  ;;  %v919_v63 = vld [vmem:[%s1684_s1 + $0x1e8] sm:$0xff]  ;;  %v299_v3 = vrot.slane %v1270_v60, 1 }
  0x1d   : > { %323 = vmatpush.msra.mxu0 %v933_v39  ;;  %369 = vmatpush.msra.mxu2 %v934_v40  ;;  %v205_v55 = vld [vmem:[%s1684_s1 + $0xd8] sm:$0xff]  ;;  %v202_v59 = vld [vmem:[%s1684_s1 + $0xc0] sm:$0xff]  ;;  %v923_v0 = vld [vmem:[%s1684_s1 + $0x208] sm:$0xff] }
  0x1e   : > { %414 = vmatpush.msrb.mxu1 %v938_v41  ;;  %461 = vmatpush.msra.mxu3 %v214_v42  ;;  %v921_v56 = vld [vmem:[%s1684_s1 + $0x1f8] sm:$0xff]  ;;  %v232_v61 = vld [vmem:[%s1147_s29] sm:$0xfe]  ;;  %v199_v1 = vld [vmem:[%s1684_s1 + $0xa8] sm:$0xff] }
  0x1f   : > { %324 = vmatpush.msra.mxu0 %v930_v43  ;;  %966 = vmatmul.msk.f32.vlgmr.msra.gmra.mxu1 %vm310_vm1, %v1167_v26  ;;  %v918_v62 = vld [vmem:[%s1684_s1 + $0x1e0] sm:$0xff]  ;;  %v298_v2 = vrot.slane %v232_v61, 1  ;;  %v915_v4 = vld [vmem:[%s1684_s1 + $0x1c8] sm:$0xff]  ;;  %v916_v5 = vld [vmem:[%s1684_s1 + $0x1d0] sm:$0xff] }
  0x20   : > { %370 = vmatpush.msra.mxu2 %v931_v44  ;;  %969 = vmatmul.msk.f32.gmra.mxu3 %vm310_vm1, %v1221_v45  ;;  %v920_v6 = vld [vmem:[%s1684_s1 + $0x1f0] sm:$0xff]  ;;  %v913_v9 = vld [vmem:[%s1684_s1 + $0x1b8] sm:$0xff]  ;;  %v914_v15 = vld [vmem:[%s1684_s1 + $0x1c0] sm:$0xff] }
  0x21   : > { %415 = vmatpush.msrb.mxu1 %v935_v46  ;;  %462 = vmatpush.msra.mxu3 %v211_v47  ;;  %v196_v7 = vld [vmem:[%s1684_s1 + $0x90] sm:$0xff]  ;;  %v300_v10 = vsel %vm297_vm0, %v298_v2, %v299_v3  ;;  %v917_v11 = vld [vmem:[%s1684_s1 + $0x1d8] sm:$0xff]  ;;  %v190_v16 = vld [vmem:[%s1684_s1 + $0x60] sm:$0xff] }
  0x22   : > { %325 = vmatpush.msra.mxu0 %v927_v48  ;;  %371 = vmatpush.msra.mxu2 %v928_v49  ;;  %v912_v8 = vld [vmem:[%s1684_s1 + $0x1b0] sm:$0xff]  ;;  %v193_v12 = vld [vmem:[%s1684_s1 + $0x78] sm:$0xff]  ;;  %v226_v17 = vld [vmem:[%s1684_s1 + $0x180] sm:$0xff] }
  0x23   : > { %416 = vmatpush.msrb.mxu1 %v932_v50  ;;  %463 = vmatpush.msra.mxu3 %v208_v51  ;;  %v229_v13 = vld [vmem:[%s1684_s1 + $0x198] sm:$0xff]  ;;  %v224_v14 = vld [vmem:[%s1684_s1 + $0x170] sm:$0xff]  ;;  %v234_v20 = vld [vmem:[%s1147_s29 + $0x20] sm:$0x1] }
  0x24   : > { %326 = vmatpush.msra.mxu0 %v924_v52  ;;  %372 = vmatpush.msra.mxu2 %v925_v53  ;;  %v221_v18 = vld [vmem:[%s1684_s1 + $0x158] sm:$0xff]  ;;  %v187_v22 = vld [vmem:[%s1684_s1 + $0x48] sm:$0xff]  ;;  %v218_v23 = vld [vmem:[%s1684_s1 + $0x140] sm:$0xff]  ;;  %v304_v24 = vrot.slane %v234_v20, 1 }
  0x25   : > { %417 = vmatpush.msrb.mxu1 %v929_v54  ;;  %464 = vmatpush.msra.mxu3 %v205_v55  ;;  %v225_v21 = vld [vmem:[%s1684_s1 + $0x178] sm:$0xff]  ;;  %v230_v25 = vld [vmem:[%s1684_s1 + $0x1a0] sm:$0xff]  ;;  %v184_v27 = vld [vmem:[%s1684_s1 + $0x30] sm:$0xff] }
  0x26   : > { %327 = vmatpush.msra.mxu0 %v921_v56  ;;  %373 = vmatpush.msra.mxu2 %v922_v57  ;;  %v215_v28 = vld [vmem:[%s1684_s1 + $0x128] sm:$0xff]  ;;  %v181_v31 = vld [vmem:[%s1684_s1 + $0x18] sm:$0xff]  ;;  %v212_v32 = vld [vmem:[%s1684_s1 + $0x110] sm:$0xff]  ;;  %v305_v33 = vsel %vm297_vm0, %v299_v3, %v304_v24 }
  0x27   : > { %418 = vmatpush.msrb.mxu1 %v926_v58  ;;  %465 = vmatpush.msra.mxu3 %v202_v59  ;;  %v227_v29 = vld [vmem:[%s1684_s1 + $0x188] sm:$0xff]  ;;  %v216_v34 = vld [vmem:[%s1684_s1 + $0x130] sm:$0xff]  ;;  %v178_v35 = vld [vmem:[%s1684_s1] sm:$0xff] }
  0x28   : > { %328 = vmatpush.msra.mxu0 %v918_v62  ;;  %967 = vmatmul.msk.f32.gmra.mxu1 %vm310_vm1, %v1221_v45  ;;  %v219_v30 = vld [vmem:[%s1684_s1 + $0x148] sm:$0xff]  ;;  %v209_v36 = vld [vmem:[%s1684_s1 + $0xf8] sm:$0xff]  ;;  %v1380_v37 = vld [vmem:[%s1147_s29] sm:$0xff] }
  0x29   : > { %374 = vmatpush.msra.mxu2 %v919_v63  ;;  %970 = vmatmul.msk.f32.vlgmr.msrb.gmra.mxu3 %vm310_vm1, %v1167_v26  ;;  %v222_v26 = vld [vmem:[%s1684_s1 + $0x160] sm:$0xff]  ;;  %v213_v38 = vld [vmem:[%s1684_s1 + $0x118] sm:$0xff]  ;;  %v1023_v40 = vld [vmem:[%s1684_s1 + $0x4c8] sm:$0xff] }
  0x2a   : > { %419 = vmatpush.msrb.mxu1 %v923_v0  ;;  %466 = vmatpush.msra.mxu3 %v199_v1  ;;  %v206_v39 = vld [vmem:[%s1684_s1 + $0xe0] sm:$0xff]  ;;  %v231_v41 = vld [vmem:[%s1684_s1 + $0x1a8] sm:$0xff]  ;;  %v1020_v44 = vld [vmem:[%s1684_s1 + $0x4b0] sm:$0xff] }
  0x2b   : > { %329 = vmatpush.msra.mxu0 %v915_v4  ;;  %375 = vmatpush.msra.mxu2 %v916_v5  ;;  %v210_v42 = vld [vmem:[%s1684_s1 + $0x100] sm:$0xff]  ;;  %v203_v43 = vld [vmem:[%s1684_s1 + $0xc8] sm:$0xff]  ;;  %v200_v47 = vld [vmem:[%s1684_s1 + $0xb0] sm:$0xff] }
  0x2c   : > { %420 = vmatpush.msrb.mxu1 %v920_v6  ;;  %467 = vmatpush.msra.mxu3 %v196_v7  ;;  %v207_v46 = vld [vmem:[%s1684_s1 + $0xe8] sm:$0xff]  ;;  %v1017_v49 = vld [vmem:[%s1684_s1 + $0x498] sm:$0xff]  ;;  %v204_v50 = vld [vmem:[%s1684_s1 + $0xd0] sm:$0xff] }
  0x2d   : > { %330 = vmatpush.msra.mxu0 %v912_v8  ;;  %376 = vmatpush.msra.mxu2 %v913_v9  ;;  %v1414_v48 = vld [vmem:[%s1147_s29 + $0x8] sm:$0xff]  ;;  %v197_v51 = vld [vmem:[%s1684_s1 + $0x98] sm:$0xff]  ;;  %v194_v53 = vld [vmem:[%s1684_s1 + $0x80] sm:$0xff] }
  0x2e   : > { %377 = vmatmul.f32.vlgmr.msra.gmra.mxu2 %v300_v10  ;;  %421 = vmatpush.msrb.mxu1 %v917_v11  ;;  %v201_v52 = vld [vmem:[%s1684_s1 + $0xb8] sm:$0xff]  ;;  %v1024_v54 = vld [vmem:[%s1684_s1 + $0x4d0] sm:$0xff]  ;;  %v1014_v55 = vld [vmem:[%s1684_s1 + $0x480] sm:$0xff] }
  0x2f   : > { %468 = vmatpush.msra.mxu3 %v193_v12  ;;  %495 = vmatpush.msrb.mxu0 %v229_v13  ;;  %v198_v56 = vld [vmem:[%s1684_s1 + $0xa0] sm:$0xff]  ;;  %v191_v57 = vld [vmem:[%s1684_s1 + $0x68] sm:$0xff]  ;;  %v1021_v58 = vld [vmem:[%s1684_s1 + $0x4b8] sm:$0xff] }
  0x30   : > { %504 = vmatpush.msrb.mxu2 %v224_v14  ;;  %331 = vmatmul.f32.vlgmr.msra.gmra.mxu0 %v300_v10  ;;  %v1011_v59 = vld [vmem:[%s1684_s1 + $0x468] sm:$0xff]  ;;  %v188_v62 = vld [vmem:[%s1684_s1 + $0x50] sm:$0xff]  ;;  %v1018_v63 = vld [vmem:[%s1684_s1 + $0x4a0] sm:$0xff] }
  0x31   : > { %422 = vmatpush.msrb.mxu1 %v914_v15  ;;  %469 = vmatpush.msra.mxu3 %v190_v16  ;;  %v195_v61 = vld [vmem:[%s1684_s1 + $0x88] sm:$0xff]  ;;  %v192_v0 = vld [vmem:[%s1684_s1 + $0x70] sm:$0xff]  ;;  %v185_v1 = vld [vmem:[%s1684_s1 + $0x38] sm:$0xff] }
  0x32   : > { %496 = vmatpush.msrb.mxu0 %v226_v17  ;;  %505 = vmatpush.msrb.mxu2 %v221_v18  ;;  %v1008_v2 = vld [vmem:[%s1684_s1 + $0x450] sm:$0xff]  ;;  %v1015_v3 = vld [vmem:[%s1684_s1 + $0x488] sm:$0xff]  ;;  %v189_v4 = vld [vmem:[%s1684_s1 + $0x58] sm:$0xff] }
  0x33   : > { %423 = vmatmul.f32.vlgmr.msrb.gmra.mxu1 %v300_v10  ;;  %971 = vmatmul.msk.f32.gmra.mxu3 %vm310_vm1, %v1221_v45  ;;  %v228_v45 = vld [vmem:[%s1684_s1 + $0x190] sm:$0xff]  ;;  %v182_v5 = vld [vmem:[%s1684_s1 + $0x20] sm:$0xff]  ;;  %v1005_v6 = vld [vmem:[%s1684_s1 + $0x438] sm:$0xff] }
  0x34   : > { %550 = vmatpush.msra.mxu0 %v225_v21  ;;  %470 = vmatpush.msra.mxu3 %v187_v22  ;;  %v1012_v7 = vld [vmem:[%s1684_s1 + $0x470] sm:$0xff]  ;;  %v186_v8 = vld [vmem:[%s1684_s1 + $0x40] sm:$0xff]  ;;  %v179_v9 = vld [vmem:[%s1684_s1 + $0x8] sm:$0xff] }
  0x35   : > { %506 = vmatpush.msrb.mxu2 %v218_v23  ;;  %541 = vmatpush.msra.mxu1 %v230_v25  ;;  %v1002_v10 = vld [vmem:[%s1684_s1 + $0x420] sm:$0xff]  ;;  %v1009_v11 = vld [vmem:[%s1684_s1 + $0x458] sm:$0xff]  ;;  %v183_v12 = vld [vmem:[%s1684_s1 + $0x28] sm:$0xff] }
  0x36   : > { %551 = vmatpush.msra.mxu0 %v222_v26  ;;  %471 = vmatpush.msra.mxu3 %v184_v27  ;;  %v1029_v13 = vld [vmem:[%s1684_s1 + $0x4f8] sm:$0xff]  ;;  %v999_v14 = vld [vmem:[%s1684_s1 + $0x408] sm:$0xff]  ;;  %v1006_v15 = vld [vmem:[%s1684_s1 + $0x440] sm:$0xff] }
  0x37   : > { %507 = vmatpush.msrb.mxu2 %v215_v28  ;;  %542 = vmatpush.msra.mxu1 %v227_v29  ;;  %v180_v16 = vld [vmem:[%s1684_s1 + $0x10] sm:$0xff]  ;;  %v1026_v17 = vld [vmem:[%s1684_s1 + $0x4e0] sm:$0xff]  ;;  %v1003_v20 = vld [vmem:[%s1684_s1 + $0x428] sm:$0xff] }
  0x38   : > { %552 = vmatpush.msra.mxu0 %v219_v30  ;;  %472 = vmatpush.msra.mxu3 %v181_v31  ;;  %v996_v18 = vld [vmem:[%s1684_s1 + $0x3f0] sm:$0xff]  ;;  %v1025_v21 = vld [vmem:[%s1684_s1 + $0x4d8] sm:$0xff]  ;;  %v1022_v24 = vld [vmem:[%s1684_s1 + $0x4c0] sm:$0xff] }
  0x39   : > { %508 = vmatpush.msrb.mxu2 %v212_v32  ;;  %334 = vmatmul.f32.gmra.mxu0 %v305_v33  ;;  %v993_v22 = vld [vmem:[%s1684_s1 + $0x3d8] sm:$0xff]  ;;  %v1000_v23 = vld [vmem:[%s1684_s1 + $0x410] sm:$0xff]  ;;  %v990_v25 = vld [vmem:[%s1684_s1 + $0x3c0] sm:$0xff] }
  0x3a   : > { %380 = vmatmul.f32.gmra.mxu2 %v305_v33  ;;  %553 = vmatpush.msra.mxu0 %v216_v34  ;;  %v997_v26 = vld [vmem:[%s1684_s1 + $0x3f8] sm:$0xff]  ;;  %v1019_v27 = vld [vmem:[%s1684_s1 + $0x4a8] sm:$0xff]  ;;  %v1030_v30 = vld [vmem:[%s1684_s1 + $0x500] sm:$0xff] }
  0x3b   : > { %473 = vmatpush.msra.mxu3 %v178_v35  ;;  %509 = vmatpush.msrb.mxu2 %v209_v36  ;;  %v597_v28 = vld [vmem:[%s1147_s29 + $0x8] sm:$0xfc]  ;;  %v994_v31 = vld [vmem:[%s1684_s1 + $0x3e0] sm:$0xff]  ;;  %v1016_v32 = vld [vmem:[%s1684_s1 + $0x490] sm:$0xff]  ;;  %v664_v36 = vrot.slane %v1153_v19, 2 }
  0x3c   : > { %426 = vmatmul.f32.gmra.mxu1 %v305_v33  ;;  %474 = vmatmul.f32.vlgmr.msra.gmra.mxu3 %v1380_v37  ;;  %v987_v29 = vld [vmem:[%s1684_s1 + $0x3a8] sm:$0xff]  ;;  %v596_v33 = vld [vmem:[%s1147_s29] sm:$0xfc]  ;;  %v984_v34 = vld [vmem:[%s1684_s1 + $0x390] sm:$0xff]  ;;  %v663_v35 = vrot.slane %v597_v28, 2 }
  0x3d   : > { %554 = vmatpush.msra.mxu0 %v213_v38  ;;  %510 = vmatpush.msrb.mxu2 %v206_v39  ;;  %v1013_v38 = vld [vmem:[%s1684_s1 + $0x478] sm:$0xff] }
  0x3e   : > { %676 = vmatpush.msrb.mxu3 %v1023_v40  ;;  %587 = vmatpush.msrb.mxu1 %v231_v41  ;;  %v981_v39 = vld [vmem:[%s1684_s1 + $0x378] sm:$0xff]  ;;  %v660_v40 = vrot.slane %v596_v33, 2  ;;  %v661_v41 = vrot.slane %v1270_v60, 2  ;;  %v820_v33 = vld [vmem:[%s1685_s2] sm:$0x7] }
  0x3f   : > { %555 = vmatpush.msra.mxu0 %v210_v42  ;;  %511 = vmatpush.msrb.mxu2 %v203_v43  ;;  %v988_v42 = vld [vmem:[%s1684_s1 + $0x3b0] sm:$0xff]  ;;  %v1010_v43 = vld [vmem:[%s1684_s1 + $0x460] sm:$0xff] }
  0x40   : > { %677 = vmatpush.msrb.mxu3 %v1020_v44  ;;  %588 = vmatpush.msrb.mxu1 %v228_v45  ;;  %v978_v44 = vld [vmem:[%s1684_s1 + $0x360] sm:$0xff]  ;;  %v665_v45 = vsel %vm659_vm2, %v663_v35, %v664_v36 }
  0x41   : > { %556 = vmatpush.msra.mxu0 %v207_v46  ;;  %512 = vmatpush.msrb.mxu2 %v200_v47  ;;  %v1007_v46 = vld [vmem:[%s1684_s1 + $0x448] sm:$0xff] }
  0x42   : > { %972 = vmatmul.msk.f32.vlgmr.msrb.gmra.mxu0 %vm310_vm1, %v1414_v48  ;;  %678 = vmatpush.msrb.mxu3 %v1017_v49  ;;  %v599_v47 = vld [vmem:[%s1147_s29 + $0x28] sm:$0x3] }
  0x43   : > { %557 = vmatpush.msra.mxu0 %v204_v50  ;;  %513 = vmatpush.msrb.mxu2 %v197_v51  ;;  %v1027_v49 = vld [vmem:[%s1684_s1 + $0x4e8] sm:$0xff]  ;;  %v1004_v50 = vld [vmem:[%s1684_s1 + $0x430] sm:$0xff]  ;;  %v598_v51 = vld [vmem:[%s1147_s29 + $0x20] sm:$0x3] }
  0x44   : > { %477 = vmatmul.f32.gmra.mxu3 %v1270_v60  ;;  %974 = vmatmul.msk.f32.vlgmr.msra.gmra.mxu1 %vm310_vm1, %v1414_v48 }
  0x45   : > { %558 = vmatpush.msra.mxu0 %v201_v52  ;;  %514 = vmatpush.msrb.mxu2 %v194_v53  ;;  %v1031_v52 = vld [vmem:[%s1684_s1 + $0x508] sm:$0xff]  ;;  %v668_v53 = vrot.slane %v599_v47, 2 }
  0x46   : > { %722 = vmatpush.msra.mxu1 %v1024_v54  ;;  %679 = vmatpush.msrb.mxu3 %v1014_v55  ;;  %v979_v54 = vld [vmem:[%s1684_s1 + $0x368] sm:$0xff]  ;;  %v1001_v55 = vld [vmem:[%s1684_s1 + $0x418] sm:$0xff] }
  0x47   : > { %559 = vmatpush.msra.mxu0 %v198_v56  ;;  %515 = vmatpush.msrb.mxu2 %v191_v57  ;;  %v666_v56 = vrot.slane %v598_v51, 2  ;;  %v1028_v57 = vld [vmem:[%s1684_s1 + $0x4f0] sm:$0xff] }
  0x48   : > { %723 = vmatpush.msra.mxu1 %v1021_v58  ;;  %680 = vmatpush.msrb.mxu3 %v1011_v59  ;;  %v998_v58 = vld [vmem:[%s1684_s1 + $0x400] sm:$0xff]  ;;  %v669_v59 = vsel %vm659_vm2, %v664_v36, %v668_v53 }
  0x49   : > { %560 = vmatpush.msra.mxu0 %v195_v61  ;;  %516 = vmatpush.msrb.mxu2 %v188_v62  ;;  %v995_v61 = vld [vmem:[%s1684_s1 + $0x3e8] sm:$0xff]  ;;  %v667_v62 = vsel %vm659_vm2, %v661_v41, %v666_v56 }
  0x4a   : > { %724 = vmatpush.msra.mxu1 %v1018_v63  ;;  %973 = vmatmul.msk.f32.gmra.mxu0 %vm310_vm1, %v1153_v19  ;;  %v992_v63 = vld [vmem:[%s1684_s1 + $0x3d0] sm:$0xff] }
  0x4b   : > { %561 = vmatpush.msra.mxu0 %v192_v0  ;;  %517 = vmatpush.msrb.mxu2 %v185_v1  ;;  %v989_v0 = vld [vmem:[%s1684_s1 + $0x3b8] sm:$0xff]  ;;  %v986_v1 = vld [vmem:[%s1684_s1 + $0x3a0] sm:$0xff] }
  0x4c   : > { %681 = vmatpush.msrb.mxu3 %v1008_v2  ;;  %725 = vmatpush.msra.mxu1 %v1015_v3  ;;  %v983_v2 = vld [vmem:[%s1684_s1 + $0x388] sm:$0xff]  ;;  %v980_v3 = vld [vmem:[%s1684_s1 + $0x370] sm:$0xff] }
  0x4d   : > { %975 = vmatmul.msk.f32.gmra.mxu1 %vm310_vm1, %v1153_v19  ;;  %562 = vmatpush.msra.mxu0 %v189_v4 }
  0x4e   : > { %518 = vmatpush.msrb.mxu2 %v182_v5  ;;  %682 = vmatpush.msrb.mxu3 %v1005_v6 }
  0x4f   : > { %726 = vmatpush.msra.mxu1 %v1012_v7  ;;  %563 = vmatpush.msra.mxu0 %v186_v8 }
  0x50   : > { %519 = vmatpush.msrb.mxu2 %v179_v9  ;;  %683 = vmatpush.msrb.mxu3 %v1002_v10 }
  0x51   : > { %727 = vmatpush.msra.mxu1 %v1009_v11  ;;  %520 = vmatmul.f32.vlgmr.msrb.gmra.mxu2 %v1380_v37 }
  0x52   : > { %564 = vmatpush.msra.mxu0 %v183_v12  ;;  %713 = vmatpush.msra.mxu2 %v1029_v13 }
  0x53   : > { %684 = vmatpush.msrb.mxu3 %v999_v14  ;;  %728 = vmatpush.msra.mxu1 %v1006_v15 }
  0x54   : > { %565 = vmatpush.msra.mxu0 %v180_v16  ;;  %714 = vmatpush.msra.mxu2 %v1026_v17 }
  0x55   : > { %566 = vmatmul.f32.vlgmr.msra.gmra.mxu0 %v1380_v37  ;;  %685 = vmatpush.msrb.mxu3 %v996_v18  ;;  %v991_v37 = vld [vmem:[%s1684_s1 + $0x3c8] sm:$0xff] }
  0x56   : > { %729 = vmatpush.msra.mxu1 %v1003_v20  ;;  %768 = vmatpush.msrb.mxu2 %v1025_v21 }
  0x57   : > { %976 = vmatmul.msk.f32.vlgmr.msrb.gmra.mxu1 %vm310_vm1, %v1414_v48  ;;  %686 = vmatpush.msrb.mxu3 %v993_v22  ;;  %v662_v48 = vsel %vm659_vm2, %v660_v40, %v661_v41 }
  0x58   : > { %730 = vmatpush.msra.mxu1 %v1000_v23  ;;  %769 = vmatpush.msrb.mxu2 %v1022_v24 }
  0x59   : > { %687 = vmatpush.msrb.mxu3 %v990_v25  ;;  %523 = vmatmul.f32.gmra.mxu2 %v1270_v60 }
  0x5a   : > { %731 = vmatpush.msra.mxu1 %v997_v26  ;;  %770 = vmatpush.msrb.mxu2 %v1019_v27 }
  0x5b   : > { %688 = vmatpush.msrb.mxu3 %v987_v29  ;;  %759 = vmatpush.msrb.mxu0 %v1030_v30 }
  0x5c   : > { %732 = vmatpush.msra.mxu1 %v994_v31  ;;  %771 = vmatpush.msrb.mxu2 %v1016_v32 }
  0x5d   : > { %569 = vmatmul.f32.gmra.mxu0 %v1270_v60  ;;  %689 = vmatpush.msrb.mxu3 %v984_v34  ;;  %v985_v60 = vld [vmem:[%s1684_s1 + $0x398] sm:$0xff] }
  0x5e   : > { %733 = vmatpush.msra.mxu1 %v991_v37  ;;  %772 = vmatpush.msrb.mxu2 %v1013_v38 }
  0x5f   : > { %977 = vmatmul.msk.f32.gmra.mxu1 %vm310_vm1, %v1153_v19  ;;  %690 = vmatpush.msrb.mxu3 %v981_v39  ;;  %v982_v19 = vld [vmem:[%s1684_s1 + $0x380] sm:$0xff]  ;;  %v823_v39 = vperm.slane %v820_v33, 1 }
  0x60   : > { %734 = vmatpush.msra.mxu1 %v988_v42  ;;  %773 = vmatpush.msrb.mxu2 %v1010_v43 }
  0x61   : > { %691 = vmatpush.msrb.mxu3 %v978_v44  ;;  %1032 = vmatmul.msk.f32.vlgmr.msra.gmra.mxu2 %vm310_vm1, %v665_v45 }
  0x62   : > { %735 = vmatpush.msra.mxu1 %v985_v60  ;;  %774 = vmatpush.msrb.mxu2 %v1007_v46 }
  0x63   : > { %692 = vmatmul.f32.vlgmr.msrb.gmra.mxu3 %v662_v48  ;;  %760 = vmatpush.msrb.mxu0 %v1027_v49 }
  0x64   : > { %736 = vmatpush.msra.mxu1 %v982_v19  ;;  %775 = vmatpush.msrb.mxu2 %v1004_v50 }
  0x65   : > { %805 = vmatpush.msra.mxu3 %v1031_v52  ;;  %1034 = vmatmul.msk.f32.vlgmr.msrb.gmra.mxu0 %vm310_vm1, %v665_v45 }
  0x66   : > { %737 = vmatpush.msra.mxu1 %v979_v54  ;;  %776 = vmatpush.msrb.mxu2 %v1001_v55 }
  0x67   : > { %738 = vmatmul.f32.vlgmr.msra.gmra.mxu1 %v662_v48  ;;  %806 = vmatpush.msra.mxu3 %v1028_v57 }
  0x68   : > { %777 = vmatpush.msrb.mxu2 %v998_v58 }
  0x69   : > { %1033 = vmatmul.msk.f32.gmra.mxu2 %vm310_vm1, %v669_v59 }
  0x6a   : > { %778 = vmatpush.msrb.mxu2 %v995_v61 }
  0x6b   : > { %695 = vmatmul.f32.gmra.mxu3 %v667_v62 }
  0x6c   : > { %779 = vmatpush.msrb.mxu2 %v992_v63 }
  0x6d   : > { %1035 = vmatmul.msk.f32.gmra.mxu0 %vm310_vm1, %v669_v59 }
  0x6e   : > { %780 = vmatpush.msrb.mxu2 %v989_v0 }
  0x6f   : > { %741 = vmatmul.f32.gmra.mxu1 %v667_v62 }
  0x70   : > { %781 = vmatpush.msrb.mxu2 %v986_v1 }
  0x72   : > { %782 = vmatpush.msrb.mxu2 %v983_v2 }
  0x73   : > { %1036 = vmatmul.msk.f32.vlgmr.msra.gmra.mxu3 %vm310_vm1, %v665_v45  ;;  %v822_v45 = vperm.slane %v820_v33, 0 }
  0x74   : > { %783 = vmatpush.msrb.mxu2 %v980_v3 }
  0x75   : > { %784 = vmatmul.f32.vlgmr.msrb.gmra.mxu2 %v662_v48 }
  0x7b   : > { %1037 = vmatmul.msk.f32.gmra.mxu3 %vm310_vm1, %v669_v59 }
  0x7d   : > { %787 = vmatmul.f32.gmra.mxu2 %v667_v62 }
  0x9a   : > { %v401_v6 = vpop.f32.mrf.mxu3 }
  0x9c   : > { %v355_v4 = vpop.f32.mrf.mxu1 }
  0xa3   : > { %v404_v9 = vpop.f32.mrf.mxu3 }
  0xa5   : > { %v358_v5 = vpop.f32.mrf.mxu1 }
  0xac   : > { %v447_v12 = vpop.f32.mrf.mxu3 }
  0xad   : > { %v332_v7 = vpop.f32.mrf.mxu0 }
  0xae   : > { %v356_v30 = vadd.f32 %v355_v4, %v332_v7 }
  0xb0   : > { %v1653_v8 = vpop.f32.mrf.mxu1 }
  0xb1   : > { %v378_v15 = vpop.f32.mrf.mxu2  ;;  %v448_v0 = vadd.f32 %v447_v12, %v1653_v8 }
  0xb2   : > { %v402_v29 = vadd.f32 %v401_v6, %v378_v15 }
  0xb6   : > { %v335_v10 = vpop.f32.mrf.mxu0  ;;  %v1657_v17 = vpop.f32.mrf.mxu3 }
  0xb7   : > { %v359_v60 = vadd.f32 %v358_v5, %v335_v10  ;;  %v824_v10 = vperm.slane %v820_v33, 2 }
  0xb9   : > { %v1655_v11 = vpop.f32.mrf.mxu1 }
  0xbd   : > { %v381_v20 = vpop.f32.mrf.mxu2 }
  0xbe   : > { %v405_v40 = vadd.f32 %v404_v9, %v381_v20 }
  0xbf   : > { %v498_v13 = vpop.f32.mrf.mxu0  ;;  %v475_v22 = vpop.f32.mrf.mxu3 }
  0xc0   : > { %v476_v34 = vadd.f32 %v475_v22, %v356_v30 }
  0xc1   : > { %v544_v14 = vpop.f32.mrf.mxu1 }
  0xc2   : > { %v499_v42 = vadd.f32 %v498_v13, %v476_v34  ;;  %v451_v13 = vadd.f32 %v1657_v17, %v1655_v11 }
  0xc7   : > { %v501_v16 = vpop.f32.mrf.mxu0  ;;  %v478_v28 = vpop.f32.mrf.mxu3 }
  0xc8   : > { %v479_v19 = vadd.f32 %v478_v28, %v359_v60 }
  0xca   : > { %v547_v18 = vpop.f32.mrf.mxu1  ;;  %v502_v58 = vadd.f32 %v501_v16, %v479_v19 }
  0xd2   : > { %v567_v21 = vpop.f32.mrf.mxu0 }
  0xd3   : > { %v568_v3 = vadd.f32 %v567_v21, %v448_v0 }
  0xd4   : > { %v590_v23 = vpop.f32.mrf.mxu1  ;;  %v521_v24 = vpop.f32.mrf.mxu2 }
  0xd5   : > { %v522_v31 = vadd.f32 %v521_v24, %v402_v29  ;;  %v591_v7 = vadd.f32 %v590_v23, %v568_v3 }
  0xd7   : > { %v545_v37 = vadd.f32 %v544_v14, %v522_v31 }
  0xda   : > { %v570_v25 = vpop.f32.mrf.mxu0 }
  0xdb   : > { %v571_v15 = vadd.f32 %v570_v25, %v451_v13 }
  0xdc   : > { %v1660_v26 = vpop.f32.mrf.mxu1  ;;  %v524_v27 = vpop.f32.mrf.mxu2 }
  0xdd   : > { %v525_v46 = vadd.f32 %v524_v27, %v405_v40  ;;  %v594_v20 = vadd.f32 %v1660_v26, %v571_v15 }
  0xdf   : > { %v548_v54 = vadd.f32 %v547_v18, %v525_v46 }
  0xe2   : > { %v762_v32 = vpop.f32.mrf.mxu0 }
  0xe4   : > { %v739_v35 = vpop.f32.mrf.mxu1  ;;  %v716_v36 = vpop.f32.mrf.mxu2 }
  0xe5   : > { %v763_v38 = vadd.f32 %v762_v32, %v739_v35 }
  0xe6   : > { %v693_v41 = vpop.f32.mrf.mxu3 }
  0xe7   : > { %v815_v43 = vadd.f32 %v763_v38, %v545_v37  ;;  %v717_v44 = vadd.f32 %v716_v36, %v693_v41 }
  0xe9   : > { %v829_v47 = vadd.f32 %v823_v39, %v815_v43  ;;  %v814_v48 = vadd.f32 %v717_v44, %v499_v42 }
  0xea   : > { %v765_v49 = vpop.f32.mrf.mxu0 }
  0xeb   : > { %v835_v50 = vmax.f32 %v829_v47, 0.0  ;;  %v828_v51 = vadd.f32 %v822_v45, %v814_v48 }
  0xec   : > { %v742_v52 = vpop.f32.mrf.mxu1  ;;  %v719_v53 = vpop.f32.mrf.mxu2 }
  0xed   : > { %841 = vst [vmem:[%s1668_s7 + $0x8] sm:$0xff] %v835_v50  ;;  %v834_v55 = vmax.f32 %v828_v51, 0.0  ;;  %v766_v56 = vadd.f32 %v765_v49, %v742_v52 }
  0xee   : > { %v696_v57 = vpop.f32.mrf.mxu3 }
  0xef   : > { %840 = vst [vmem:[%s1668_s7] sm:$0xff] %v834_v55  ;;  %v818_v59 = vadd.f32 %v766_v56, %v548_v54  ;;  %v720_v61 = vadd.f32 %v719_v53, %v696_v57 }
  0xf1   : > { %v832_v62 = vadd.f32 %v823_v39, %v818_v59  ;;  %v817_v63 = vadd.f32 %v720_v61, %v502_v58 }
  0xf3   : > { %v838_v1 = vmax.f32 %v832_v62, 0.0  ;;  %v831_v2 = vadd.f32 %v822_v45, %v817_v63 }
  0xf5   : > { %844 = vst [vmem:[%s1668_s7 + $0x20] sm:$0xff] %v838_v1  ;;  %v837_v4 = vmax.f32 %v831_v2, 0.0 }
  0xf6   : > { %v808_v5 = vpop.f32.mrf.mxu3 }
  0xf7   : > { %843 = vst [vmem:[%s1668_s7 + $0x18] sm:$0xff] %v837_v4 }
  0xf8   : > { %v785_v6 = vpop.f32.mrf.mxu2 }
  0xf9   : > { %v809_v9 = vadd.f32 %v808_v5, %v785_v6 }
  0xfb   : > { %v816_v14 = vadd.f32 %v809_v9, %v591_v7 }
  0xfd   : > { %v830_v16 = vadd.f32 %v824_v10, %v816_v14 }
  0xfe   : > { %v811_v8 = vpop.f32.mrf.mxu3 }
  0xff   : > { %v836_v12 = vmax.f32 %v830_v16, 0.0 }
 0x100   : > { %v788_v18 = vpop.f32.mrf.mxu2 }
 0x101   : > { %842 = vst [vmem:[%s1668_s7 + $0x10] sm:$0xff] %v836_v12  ;;  %v812_v21 = vadd.f32 %v811_v8, %v788_v18 }
 0x103   : > { %v819_v22 = vadd.f32 %v812_v21, %v594_v20 }
 0x105   : > { %v833_v24 = vadd.f32 %v824_v10, %v819_v22 }
 0x107   : > { %v839_v27 = vmax.f32 %v833_v24, 0.0 }
 0x109   : > { %845 = vst [vmem:[%s1668_s7 + $0x28] sm:$0xff] %v839_v27 }
 0x10a PF: > { %s13_s12 = sadd.s32 1, %s1056_s12  }
 0x10b   : > { %p10_p5 = scmp.ge.s32.totalorder %s13_s12, 4  }
 0x10d   :  { %12 = sbr.rel (!%p10_p5) target bundleno = 1 (0x1), region = 64 }

</bundles_post_ra>
